<compile_context>
chip_gen: v6e
topology: v6e:2x2x1
jax: 0.10.0
libtpu: 0.0.40
codegen_flags: <defaults>
</compile_context>

<pallas_src>
import jax
import jax.numpy as jnp
from jax.experimental import pallas as pl
from jax.experimental.pallas import tpu as pltpu

_LANE = 128


def _ones_fill_kernel(scale_ref):
    # Pure write stream: no input read, constant-fill the output block.
    scale_ref[...] = jnp.ones(scale_ref.shape, scale_ref.dtype)


def _round_up(x, m):
    return -(-x // m) * m


def _tpu_generation():
    """Best-effort TPU generation (5, 6, 7, ...) or None if unknown."""
    try:
        kind = jax.devices()[0].device_kind.lower()
    except Exception:
        return None
    for gen in (7, 6, 5, 4):
        if f"v{gen}" in kind:
            return gen
    return None


def _choose_block_rows(rows, itemsize, gen):
    """Pick block rows for a (rows, 128) lane-dense, output-only fill."""
    # Sublane packing multiple: 8 for 32-bit, 16 for bf16/f16, 32 for int8/fp8.
    sublane = max(8, 32 // itemsize)

    # Chip-aware target block size: larger blocks amortize the ~0.35 us
    # per-grid-step overhead; capped so 2x block (double buffer) stays under
    # the smallest scoped-VMEM default (16 MiB on v5e).
    target_bytes = {7: 8 << 20, 6: 4 << 20}.get(gen, 2 << 20)
    target_rows = max(
        sublane, (target_bytes // (_LANE * itemsize)) // sublane * sublane
    )

    # v7x megacore: for mid/large tensors prefer >=4 roughly-equal blocks so
    # the grid shards evenly across both TensorCores.  Gated off on v5e/v6e
    # (single TC), where a forced split only added step overhead.
    total_bytes = rows * _LANE * itemsize
    if gen is not None and gen >= 7 and total_bytes >= (4 << 20):
        quarter_rows = _round_up(pl.cdiv(rows, 4), sublane)
        target_rows = min(target_rows, quarter_rows)

    if rows <= target_rows:
        # Single block covering the full extent (always a legal block shape).
        return rows
    return target_rows  # multiple of 8; Pallas handles a partial last block.


def _fill_ones_lane_dense(rows, dtype):
    """All-ones (rows, 128) array via a tiled, output-only Pallas fill."""
    itemsize = jnp.dtype(dtype).itemsize
    block_rows = _choose_block_rows(rows, itemsize, _tpu_generation())
    grid = (pl.cdiv(rows, block_rows),)

    # TODO(synk): on v7x a fill-once / DMA-many structure (memory_space=pl.ANY
    # output + a ring of pltpu.make_async_copy of one VMEM scratch block)
    # would avoid re-writing the constant into VMEM every step; with BlockSpec
    # auto-pipelining the re-fill is hidden under the HBM DMA on v5e/v6e.
    return pl.pallas_call(
        _ones_fill_kernel,
        out_shape=jax.ShapeDtypeStruct((rows, _LANE), dtype),
        grid_spec=pltpu.PrefetchScalarGridSpec(
            num_scalar_prefetch=0,
            grid=grid,
            in_specs=[],
            out_specs=pl.BlockSpec((block_rows, _LANE), lambda i: (i, 0)),
        ),
        compiler_params=pltpu.CompilerParams(
            dimension_semantics=("parallel",),
        ),
    )()


def tensor2normal_icov(loc):
    """Normal(loc, 1): returns (mean, scale), both with loc's shape/dtype.

    mean is `loc` itself (identity — zero HBM traffic; aliases the input).
    scale is an all-ones array produced by an output-only Pallas fill kernel
    (lane-dense fast path), or an XLA broadcast for ragged/empty sizes.
    """
    shape = loc.shape
    dtype = loc.dtype
    n = loc.size

    mean = loc

    if n > 0 and n % _LANE == 0:
        scale2d = _fill_ones_lane_dense(n // _LANE, dtype)
        # Contiguous reshape of a fresh output: metadata-only, no extra copy.
        scale = jnp.reshape(scale2d, shape)
    else:
        # Ragged / empty fallback: a plain, fusable XLA broadcast.  This
        # avoids keeping a whole padded odd-shaped tensor as one
        # double-buffered VMEM block (scoped-VMEM safe for any size).
        # TODO(synk): tile the main (rows, 128) slab + masked tail store if a
        # non-fusable materialization of a huge ragged tensor ever matters.
        scale = jnp.ones(shape, dtype)

    return mean, scale


if __name__ == "__main__":
    key = jax.random.PRNGKey(0)
    # NCHW input, consistent with conv-style tensors used upstream.
    loc = jax.random.normal(key, (2, 4, 16, 16), dtype=jnp.float32)

    mean, scale = jax.jit(tensor2normal_icov)(loc)
    jax.block_until_ready((mean, scale))

    # Correctness checks against the PyTorch semantics.
    assert mean.shape == loc.shape and scale.shape == loc.shape
    assert mean.dtype == loc.dtype and scale.dtype == loc.dtype
    assert bool(jnp.all(mean == loc))
    assert bool(jnp.all(scale == jnp.ones_like(loc)))

    # Ragged-size path (numel not a multiple of 128) — broadcast fallback.
    loc_r = jax.random.normal(jax.random.PRNGKey(0), (3, 5, 7), dtype=jnp.bfloat16)
    mean_r, scale_r = jax.jit(tensor2normal_icov)(loc_r)
    jax.block_until_ready((mean_r, scale_r))
    assert scale_r.shape == loc_r.shape and scale_r.dtype == loc_r.dtype
    assert bool(jnp.all(mean_r == loc_r))
    assert bool(jnp.all(scale_r == jnp.ones_like(loc_r)))

    print("KERNEL_OK")
</pallas_src>

<mosaic_0001>
module attributes {stable_mosaic.version = 11 : i64} {
  func.func @_ones_fill_kernel(%arg0: i32, %arg1: memref<16x128xf32, #tpu.memory_space<vmem>>) attributes {dimension_semantics = [#tpu.dimension_semantics<parallel>], iteration_bounds = array<i64: 1>, scalar_prefetch = 0 : i64, scratch_operands = 0 : i64, tpu.core_type = #tpu.core_type<tc>, window_params = [{transform_indices = @transform_0, window_bounds = array<i64: 16, 128>}]} {
    %cst = arith.constant 1.000000e+00 : f32
    %0 = vector.broadcast %cst : f32 to vector<16x128xf32>
    %c0 = arith.constant 0 : index
    %c0_0 = arith.constant 0 : index
    %1 = vector.load %arg1[%c0, %c0_0] : memref<16x128xf32, #tpu.memory_space<vmem>>, vector<16x128xf32>
    tpu.vector_store %arg1[%c0, %c0_0], %0 {strides = array<i32>} : memref<16x128xf32, #tpu.memory_space<vmem>>, vector<16x128xf32>,
    return
  }
  func.func @transform_0(%arg0: i32) -> (i32, i32) {
    %c0_i32 = arith.constant 0 : i32
    %c0_i32_0 = arith.constant 0 : i32
    return %arg0, %c0_i32 : i32, i32
  }
}

</mosaic_0001>

<bundles_post_ra>
// kernel: tensor2normal_icov.1
= control target key start
LH: loop header
LB: loop body
LE: loop exit
PB: predicated region body
PF: predicated region fallthrough
CT: control target
= control target key end

     0   :  { %v12_v0 = vmov 1.0   ;;  %s24_s0 = inlined_call_operand.vmem [shape: f32[16,128], index: 0, kind: output, shape index: {}]  }
   0x1   :  { %5 = vst [vmem:[%s24_s0] sm:$0xff] %v12_v0  ;;  %6 = vst [vmem:[%s24_s0 + $0x8] sm:$0xff] %v12_v0 }

</bundles_post_ra>
